<compile_context>
chip_gen: v5e
topology: v5e:2x2
jax: 0.10.0
libtpu: 0.0.40
codegen_flags: <defaults>
</compile_context>

<pallas_src>
import math

import jax
import jax.numpy as jnp
from jax.experimental import pallas as pl
from jax.experimental.pallas import tpu as pltpu


def _pos_enc_kernel(x_ref, pe_ref, o_ref):
    # x_ref block: (1, TS, TD); pe_ref block: (TS, TD) shared across batch steps.
    x = x_ref[0]                          # (TS, TD), x dtype
    pe = pe_ref[...].astype(x.dtype)      # no-op when dtypes already match
    o_ref[0] = (x + pe).astype(o_ref.dtype)


def make_positional_encoding_table(d_embedding, max_len=5000, dtype=jnp.float32):
    """Builds the sinusoidal table exactly like the PyTorch __init__ (buffer init).

    Handles odd d_embedding by truncating the cos half (the canonical PyTorch
    snippet would raise in that case).
    """
    position = jnp.arange(max_len, dtype=jnp.float32)[:, None]           # (max_len, 1)
    div_term = jnp.exp(
        jnp.arange(0, d_embedding, 2, dtype=jnp.float32)
        * (-math.log(10000.0) / d_embedding)
    )                                                                     # (ceil(D/2),)
    ang = position * div_term                                             # (max_len, ceil(D/2))
    pe = jnp.zeros((max_len, d_embedding), dtype=jnp.float32)
    pe = pe.at[:, 0::2].set(jnp.sin(ang))
    pe = pe.at[:, 1::2].set(jnp.cos(ang)[:, : d_embedding // 2])
    return pe.astype(dtype)


def _pick_sublane_tile(dim, max_tile=512):
    # Multiple of 8 (<= max_tile) when possible; tiny dims use the full extent.
    if dim < 8:
        return dim
    return min(max_tile, (dim // 8) * 8)


def _pick_lane_tile(dim, max_tile=1024):
    # Multiple of 128 (<= max_tile) when possible; narrow dims use the full extent.
    if dim < 128:
        return dim
    return min(max_tile, (dim // 128) * 128)


def positional_encoding(x, pe):
    """x: (B, S, D); pe: (max_len, D) with max_len >= S. Returns x + pe[:S] (x.dtype)."""
    B, S, D = x.shape
    max_len, D_pe = pe.shape
    assert max_len >= S and D_pe == D, "pe table too small for input"

    # ---- Lane-dense fold: make the last dim a multiple of 128 when it isn't. ----
    # Row-major reshape of both x's (S, D) plane and the pe table by the same
    # factor r preserves the elementwise/broadcast correspondence.
    r = 1
    if D % 128 != 0:
        g = 128 // math.gcd(D, 128)       # smallest r with (r*D) % 128 == 0
        if g > 1 and S % g == 0 and max_len % g == 0:
            r = g
    if r > 1:
        x_k = x.reshape(B, S // r, r * D)
        pe_k = pe.reshape(max_len // r, r * D)
        S_k, D_k, L_k = S // r, r * D, max_len // r
    else:
        x_k, pe_k = x, pe
        S_k, D_k, L_k = S, D, max_len

    # ---- Tile sizes (bounded: worst case ~2 MiB/buffer, ~12 MiB double-buffered,
    #      v7x-safe). Ragged last blocks are handled by the cdiv grid. ----
    TS = _pick_sublane_tile(S_k)
    TD = _pick_lane_tile(D_k)

    # Tiny-sequence edge case: pe's sublane block must be a multiple of 8 or equal
    # pe's full row extent. Slice to S_k rows (a few-row copy, negligible bytes).
    if S_k < 8 and L_k != S_k:
        pe_k = pe_k[:S_k]
        L_k = S_k

    grid = (pl.cdiv(S_k, TS), pl.cdiv(D_k, TD), B)   # batch innermost -> pe tile reuse

    grid_spec = pltpu.PrefetchScalarGridSpec(
        num_scalar_prefetch=0,
        grid=grid,
        in_specs=[
            pl.BlockSpec((1, TS, TD), lambda s, d, b: (b, s, d)),  # x tile
            pl.BlockSpec((TS, TD), lambda s, d, b: (s, d)),        # pe tile (const over b)
        ],
        out_specs=pl.BlockSpec((1, TS, TD), lambda s, d, b: (b, s, d)),
    )

    itemsize_x = jnp.dtype(x.dtype).itemsize
    itemsize_pe = jnp.dtype(pe.dtype).itemsize
    cost = pl.CostEstimate(
        flops=B * S * D,
        transcendentals=0,
        bytes_accessed=2 * B * S * D * itemsize_x + S * D * itemsize_pe,
    )

    # TODO(synk): when the caller can donate x, pass input_output_aliases={0: 0}
    # to skip the separate output allocation (halves the HBM footprint).
    out = pl.pallas_call(
        _pos_enc_kernel,
        out_shape=jax.ShapeDtypeStruct((B, S_k, D_k), x.dtype),
        grid_spec=grid_spec,
        cost_estimate=cost,
        compiler_params=pltpu.CompilerParams(
            dimension_semantics=("parallel", "parallel", "parallel"),
            vmem_limit_bytes=48 * 1024 * 1024,
        ),
    )(x_k, pe_k)

    if r > 1:
        out = out.reshape(B, S, D)
    return out


def positional_encoding_ref(x, pe):
    return x + pe[: x.shape[1]][None, :, :].astype(x.dtype)


if __name__ == "__main__":
    key = jax.random.PRNGKey(0)
    B, S, D = 2, 8, 32          # batch=2, seq=8, d_embedding=32
    max_len = 64

    x = jax.random.normal(key, (B, S, D), dtype=jnp.float32)
    pe = make_positional_encoding_table(D, max_len=max_len)

    y = positional_encoding(x, pe)
    jax.block_until_ready(y)

    y_ref = positional_encoding_ref(x, pe)
    assert y.shape == (B, S, D)
    assert jnp.allclose(y, y_ref, atol=1e-6, rtol=1e-6)

    print("KERNEL_OK")
</pallas_src>

<mosaic_0001>
module attributes {stable_mosaic.version = 11 : i64} {
  func.func @_pos_enc_kernel(%arg0: i32, %arg1: i32, %arg2: i32, %arg3: memref<1x2x128xf32, #tpu.memory_space<vmem>>, %arg4: memref<2x128xf32, #tpu.memory_space<vmem>>, %arg5: memref<1x2x128xf32, #tpu.memory_space<vmem>>) attributes {dimension_semantics = [#tpu.dimension_semantics<parallel>, #tpu.dimension_semantics<parallel>, #tpu.dimension_semantics<parallel>], iteration_bounds = array<i64: 1, 1, 2>, scalar_prefetch = 0 : i64, scratch_operands = 0 : i64, tpu.core_type = #tpu.core_type<tc>, window_params = [{transform_indices = @transform_0, window_bounds = array<i64: 1, 2, 128>}, {transform_indices = @transform_1, window_bounds = array<i64: 2, 128>}, {transform_indices = @transform_2, window_bounds = array<i64: 1, 2, 128>}]} {
    %c0 = arith.constant 0 : index
    %c0_0 = arith.constant 0 : index
    %c0_1 = arith.constant 0 : index
    %0 = vector.load %arg3[%c0, %c0_0, %c0_1] : memref<1x2x128xf32, #tpu.memory_space<vmem>>, vector<1x2x128xf32>
    %1 = vector.shape_cast %0 : vector<1x2x128xf32> to vector<2x128xf32>
    %c0_2 = arith.constant 0 : index
    %c0_3 = arith.constant 0 : index
    %2 = vector.load %arg4[%c0_2, %c0_3] : memref<2x128xf32, #tpu.memory_space<vmem>>, vector<2x128xf32>
    %3 = arith.addf %1, %2 : vector<2x128xf32>
    %c0_4 = arith.constant 0 : index
    %c0_5 = arith.constant 0 : index
    %c0_6 = arith.constant 0 : index
    %4 = vector.load %arg5[%c0_4, %c0_5, %c0_6] : memref<1x2x128xf32, #tpu.memory_space<vmem>>, vector<1x2x128xf32>
    %5 = vector.shape_cast %4 : vector<1x2x128xf32> to vector<2x128xf32>
    %6 = vector.shape_cast %3 : vector<2x128xf32> to vector<1x2x128xf32>
    tpu.vector_store %arg5[%c0_4, %c0_5, %c0_6], %6 {strides = array<i32>} : memref<1x2x128xf32, #tpu.memory_space<vmem>>, vector<1x2x128xf32>,
    return
  }
  func.func @transform_0(%arg0: i32, %arg1: i32, %arg2: i32) -> (i32, i32, i32) {
    %c0_i32 = arith.constant 0 : i32
    return %arg2, %arg0, %arg1 : i32, i32, i32
  }
  func.func @transform_1(%arg0: i32, %arg1: i32, %arg2: i32) -> (i32, i32) {
    %c0_i32 = arith.constant 0 : i32
    return %arg0, %arg1 : i32, i32
  }
  func.func @transform_2(%arg0: i32, %arg1: i32, %arg2: i32) -> (i32, i32, i32) {
    %c0_i32 = arith.constant 0 : i32
    return %arg2, %arg0, %arg1 : i32, i32, i32
  }
}

</mosaic_0001>

<bundles_post_ra>
// kernel: tpu_custom_call.1
= control target key start
LH: loop header
LB: loop body
LE: loop exit
PB: predicated region body
PF: predicated region fallthrough
CT: control target
= control target key end

     0   :  { %7 = vsyncpa [#allocation3], 0  ;;  %s736_s0 = inlined_call_operand.hbm [shape: f32[2,2,128], index: 0, kind: input, shape index: {}]   ;;  %s737_s1 = inlined_call_operand.hbm [shape: f32[2,128], index: 1, kind: input, shape index: {}]   ;;  %s738_s2 = inlined_call_operand.hbm [shape: f32[2,2,128], index: 2, kind: output, shape index: {}]  }
   0x1   :  { %9 = vsyncpa [#allocation3 + $0x1], 0 }
   0x2   :  { %10 = vsyncpa [#allocation6], 0 }
   0x3   :  { %11 = vsyncpa [#allocation4], 0 }
   0x4   :  { %13 = vsyncpa [#allocation4 + $0x1], 0  ;;  %s587_s9 = smov 0   ;;  %s589_s10 = smov 0  }
   0x5   :  { %s591_s11 = smov 0   ;;  %s593_s12 = smov 0  }
   0x6   :  { %s595_s13 = smov 0   ;;  %s597_s14 = smov 0  }
   0x7 LB: > { %s335_s15 = sadd.s32 4294967295, %s569_s14   ;;  %s336_s16 = sadd.s32 4294967294, %s569_s14   ;;  %s569_s14 = sphi %s597_s14, %s19_s14   ;;  %s565_s13 = sphi %s595_s13, %s750_s13   ;;  %s561_s12 = sphi %s593_s12, %s749_s12   ;;  %s557_s11 = sphi %s591_s11, %s748_s11   ;;  %s553_s10 = sphi %s589_s10, %s747_s10   ;;  %s549_s9 = sphi %s587_s9, %s746_s9  }
   0x8   : > { %p62_p0 = scmp.ne.s32.totalorder %s553_s10, %s549_s9  ;;  %p621_p1 = scmp.eq.s32.totalorder %s335_s15, 0 }
   0x9   : > { %p625_p2 = scmp.eq.s32.totalorder %s335_s15, 1  ;;  %p124_p3 = scmp.eq.s32.totalorder %s336_s16, 1 }
   0xa   : > { %p631_p4 = por %p621_p1, %p62_p0  ;;  %p337_p5 = scmp.ge.s32.totalorder %s569_s14, 1 }
   0xb   : > { %p636_p6 = por %p124_p3, %p62_p0  ;;  %p131_p7 = scmp.lt.s32.totalorder %s569_s14, 3 }
   0xc   : > { %s146_s23 = sshll.u32 %s737_s1, 4  ;;  %p339_p9 = scmp.ge.s32.totalorder %s569_s14, 2  ;;  %s147_s23 = int_to_ptr.hbm [resolvable:$true] %s146_s23 }
   0xd   : > { %p644_p8 = pnand %p337_p5, %p131_p7  ;;  %s571_s25 = smov [#allocation5]  }
   0xe   : > { %s148_s26 = sshll.u32 %s571_s25, 4  ;;  %s31_s27 = sadd.s32 1, %s565_s13  ;;  %s149_s26 = int_to_ptr.vmem [resolvable:$true] %s148_s26 }
   0xf   : > { %p358_p10 = pneg %p644_p8  ;;  %p32_p12 = scmp.ge.s32.totalorder %s31_s27, 2 }
  0x10   : > { %s49_s28 = sadd.s32 1, %s557_s11  ;;  %p56_p13 = scmp.ne.s32.totalorder %s557_s11, %s553_s10 }
  0x11   : > { %p359_p11 = pnand %p358_p10, %p621_p1  ;;  %p57_p0 = scmp.eq.s32.totalorder %s569_s14, 0 }
  0x12   : > { %s752_s27 = smov (%p32_p12, %s31_s27), 0  ;;  %p666_p5 = por %p625_p2, %p56_p13 }
  0x13   : > { %361 = dma.hbm_to_vmem [thread:$0]  (!%p359_p11), %s147_s23, 32, %s149_s26, [#allocation6]  }
  0x14   : > { %p660_p3 = por %p57_p0, %p56_p13  ;;  %s42_s3 = ssub.s32 %s565_s13, %s752_s27 }
  0x15   : > { %p371_p7 = scmp.lt.s32.totalorder %s569_s14, 2  ;;  %p47_p10 = scmp.eq.s32.totalorder %s42_s3, 0 }
  0x16   : > { %s159_s4 = sand.u32 1, %s557_s11   ;;  %s341_s7 = sshll.u32 %s565_s13, 1 }
  0x17   : > { %s340_s5 = sshll.u32 %s159_s4, 1  ;;  %s169_s16 = scalar_lea.hbm %s736_s0, %s341_s7 }
  0x18   : > { %s675_s6 = scalar_select %p47_p10, %s557_s11, %s49_s28  }
  0x19   : > { %s163_s21 = scalar_lea.vmem [#allocation2], %s340_s5  ;;  %s171_s18 = sshll.u32 %s169_s16, 4  ;;  %s172_s18 = int_to_ptr.hbm [resolvable:$true] %s171_s18 }
  0x1a   : > { %s173_s22 = sshll.u32 %s163_s21, 4  ;;  %p363_p2 = pnand %p371_p7, %p660_p3  ;;  %s174_s22 = int_to_ptr.vmem [resolvable:$true] %s173_s22 }
  0x1b   : > { %s160_s23 = scalar_lea.sflag [#allocation3], %s159_s4  ;;  %182 = sbr.rel (%p644_p8) target bundleno = 50 (0x32), region = 28 }
  0x1c   : > { %365 = dma.hbm_to_vmem [thread:$0]  (!%p363_p2), %s172_s18, 32, %s174_s22, %s160_s23  }
  0x1d   : > { %s686_s25 = sand.u32 (!%p644_p8), 1, %s553_s10  }
  0x1e   : > { %s343_s26 = sshll.u32 (!%p644_p8), %s686_s25, 1  ;;  %s185_s28 = scalar_lea.sflag (!%p644_p8), [#allocation3], %s686_s25 }
  0x1f   : > { %s188_s3 = scalar_lea.vmem (!%p644_p8), [#allocation2], %s343_s26 }
  0x20   : > { %536 = dma.done.wait (%p631_p4), %s185_s28, 32  }
  0x21   : > { %538 = vsyncadd (%p631_p4), %s185_s28, 4294967264 }
  0x22   : > { %540 = dma.done.wait (%p621_p1), [#allocation6], 32  }
  0x23   : > { %542 = vsyncadd (%p621_p1), [#allocation6], 4294967264  ;;  %s347_s24 = sshll.u32 %s561_s12, 1  ;;  %s214_s7 = scalar_lea.vmem [#allocation7], %s343_s26  ;;  %v215_v0 = vld [vmem:[%s188_s3] sm:$0x3] }
  0x24   : > { %s232_s5 = scalar_lea.hbm %s738_s2, %s347_s24  ;;  %s234_s8 = sshll.u32 %s214_s7, 4  ;;  %v216_v1 = vld [vmem:[#allocation5] sm:$0x3]  ;;  %s235_s8 = int_to_ptr.vmem [resolvable:$true] %s234_s8 }
  0x25   : > { %s236_s15 = sshll.u32 %s232_s5, 4  ;;  %v217_v2 = vadd.f32 %v216_v1, %v215_v0  ;;  %s220_s19 = scalar_lea.sflag [#allocation4], %s686_s25  ;;  %s237_s15 = int_to_ptr.hbm [resolvable:$true] %s236_s15 }
  0x26   : > { %s497_s17 = sshra.s32 %s237_s15, 4  ;;  %s503_s22 = scalar_lea.hbm %s738_s2, 4  ;;  %s498_s17 = int_to_ptr.hbm [resolvable:$true] %s497_s17 }
  0x27   : > { %218 = vst [vmem:[%s214_s7] sm:$0x3] %v217_v2  ;;  %s499_s16 = scalar_lea.hbm %s498_s17, 2  ;;  %p504_p11 = scmp.lt.s32.totalorder %s498_s17, %s738_s2 }
  0x28   : > { %p500_p1 = scmp.ne.s32.totalorder %s498_s17, %s499_s16  ;;  %p505_p12 = scmp.lt.s32.totalorder %s503_s22, %s499_s16 }
  0x2a   : > { %p501_p4 = pnand %p500_p1, %p666_p5  ;;  %p506_p13 = por %p505_p12, %p504_p11 }
  0x2c   : > { %p502_p8 = pneg %p501_p4 }
  0x2e   : > { %p507_p0 = pnand %p506_p13, %p502_p8 }
  0x30   : > { %510 = shalt.err (!%p507_p0)
}
  0x31   : > { %356 = dma.vmem_to_hbm [thread:$0]  (%p666_p5), %s235_s8, 32, %s237_s15, %s220_s19  }
  0x32 PF: > { %s248_s25 = sand.u32 1, %s549_s9   ;;  %p367_p3 = pnand %p339_p9, %p636_p6 }
  0x33   : > { %s249_s26 = scalar_lea.sflag [#allocation4], %s248_s25 }
  0x34   : > { %p368_p7 = pneg %p367_p3 }
  0x36   : > { %544 = dma.done.wait (%p368_p7), %s249_s26, 32  }
  0x37   : > { %546 = vsyncadd (%p368_p7), %s249_s26, 4294967264  ;;  %s19_s14 = sadd.s32 1, %s569_s14   ;;  %s746_s9 = smov %s553_s10 }
  0x38   : > { %p16_p10 = scmp.ge.s32.totalorder %s19_s14, 4   ;;  %s747_s10 = smov %s557_s11 }
  0x39   : > { %s748_s11 = smov %s675_s6  ;;  %s749_s12 = smov %s565_s13 }
  0x3a   : > { %s750_s13 = smov %s752_s27  ;;  %18 = sbr.rel (!%p16_p10) target bundleno = 7 (0x7), region = 78 }
  0x3f   :  { %255 = vsyncpa [#allocation3], 1 }
  0x40   :  { %257 = vsyncpa [#allocation3 + $0x1], 1 }
  0x41   :  { %258 = vsyncpa [#allocation6], 1 }
  0x42   :  { %259 = vsyncpa [#allocation4], 1 }
  0x43   :  { %261 = vsyncpa [#allocation4 + $0x1], 1 }

</bundles_post_ra>
